<compile_context>
chip_gen: v7x
topology: tpu7x:2x2x1
jax: 0.10.0
libtpu: 0.0.40
codegen_flags: <defaults>
</compile_context>

<pallas_src>
import jax
import jax.numpy as jnp
from jax.experimental import pallas as pl
from jax.experimental.pallas import tpu as pltpu

F_IN = 1            # LinearNet(input_dim=1, output_dim=1) — the lesson's case
F_OUT = 1

LANES = 128         # lane width (last dim of every vreg)
SUBLANES = 8        # sublane granularity
TILE_ROWS = 4096    # 4096 x 128 f32 = 2 MiB per block (use 8192 on v6e/v7x)


def linear_kernel(x_ref, w_ref, b_ref, o_ref):
    # x_ref / o_ref: (tile, 128) lane-dense VMEM blocks (dtype = input dtype).
    # w_ref / b_ref: (1,) f32 scalars in SMEM.
    w = w_ref[0]
    b = b_ref[0]
    # Compute in f32 on the VPU; cast back to the I/O dtype on store (free,
    # hidden under the DMA of this bandwidth-bound kernel).
    o_ref[...] = (x_ref[...].astype(jnp.float32) * w + b).astype(o_ref.dtype)


def linear_forward(x, weight, bias, *, tile_rows=TILE_ROWS):
    """x: [N, 1]; weight: [1, 1] (torch layout); bias: [1]. Returns [N, 1]."""
    n = x.shape[0]
    out_dtype = x.dtype
    if n == 0:  # guard: empty batch (review correctness concern)
        return jnp.zeros((0, F_OUT), out_dtype)

    flat = x.reshape(-1)                               # free metadata reshape

    # Lane-dense slab: 128 consecutive samples per row; rows rounded up to the
    # 8-sublane granularity.  Pad is <= 1023 elements and is skipped entirely
    # when N is already a multiple of 1024 (typical training batch sizes).
    rows = pl.cdiv(n, LANES)
    rows_pad = ((rows + SUBLANES - 1) // SUBLANES) * SUBLANES
    pad = rows_pad * LANES - n
    if pad:
        # NOTE(perf): in a real training loop keep activations in this padded
        # slab across steps so the pad/unpad copies happen at most once.
        flat = jnp.pad(flat, (0, pad))
    x2d = flat.reshape(rows_pad, LANES)

    # Biggest tile that fits the data (rows_pad is a multiple of 8, so tile is
    # too).  The grid's partial final block (when rows_pad % tile != 0) is
    # masked by Pallas — no padding up to a tile multiple.
    tile = min(tile_rows, rows_pad)
    grid = pl.cdiv(rows_pad, tile)

    w_s = weight.reshape(1).astype(jnp.float32)        # scalar weight -> SMEM
    b_s = bias.reshape(1).astype(jnp.float32)          # scalar bias   -> SMEM

    itemsize = jnp.dtype(out_dtype).itemsize
    cost = pl.CostEstimate(flops=2 * n, transcendentals=0,
                           bytes_accessed=2 * n * itemsize)

    out2d = pl.pallas_call(
        linear_kernel,
        out_shape=jax.ShapeDtypeStruct((rows_pad, LANES), out_dtype),
        grid_spec=pltpu.PrefetchScalarGridSpec(
            num_scalar_prefetch=0,
            grid=(grid,),
            in_specs=[
                pl.BlockSpec((tile, LANES), lambda i: (i, 0)),
                pl.BlockSpec(memory_space=pltpu.MemorySpace.SMEM),
                pl.BlockSpec(memory_space=pltpu.MemorySpace.SMEM),
            ],
            out_specs=pl.BlockSpec((tile, LANES), lambda i: (i, 0)),
        ),
        compiler_params=pltpu.CompilerParams(
            # "parallel" lets the v7x megacore shard the 1-D grid across both
            # TensorCores; it is a no-op on the single-TC v5e/v6e.
            dimension_semantics=("parallel",),
            # Explicit limit: 2 MiB blocks double-buffered for in+out ~ 8 MiB;
            # raise above v5e's 16 MiB scoped default so headroom remains even
            # with tile_rows=8192 on v6e/v7x.
            vmem_limit_bytes=32 * 1024 * 1024,
        ),
        cost_estimate=cost,
    )(x2d, w_s, b_s)

    out = out2d.reshape(-1)
    if pad:
        out = out[:n]       # bounded copy, only when padding was actually added
    return out.reshape(n, F_OUT)


if __name__ == "__main__":
    key = jax.random.PRNGKey(0)
    kx, kw, kb, kx2 = jax.random.split(key, 4)

    # Deterministic parameter init (torch.nn.Linear(1, 1, bias=True) shapes).
    weight = jax.random.uniform(kw, (F_OUT, F_IN), jnp.float32, -1.0, 1.0)
    bias = jax.random.uniform(kb, (F_OUT,), jnp.float32, -1.0, 1.0)

    # Small input consistent with the forward: batch of 8 scalar samples.
    x = jax.random.normal(kx, (8, F_IN), jnp.float32)
    y = linear_forward(x, weight, bias)
    jax.block_until_ready(y)
    y_ref = x @ weight.T + bias
    assert y.shape == (8, F_OUT)
    assert jnp.allclose(y, y_ref, atol=1e-5, rtol=1e-5), "mismatch vs reference"

    # Second small check exercising the non-aligned pad/unpad path.
    x2 = jax.random.normal(kx2, (300, F_IN), jnp.float32)
    y2 = linear_forward(x2, weight, bias)
    jax.block_until_ready(y2)
    y2_ref = x2 @ weight.T + bias
    assert y2.shape == (300, F_OUT)
    assert jnp.allclose(y2, y2_ref, atol=1e-5, rtol=1e-5), "mismatch vs reference"

    print("KERNEL_OK")
</pallas_src>

<mosaic_0001>
module attributes {stable_mosaic.version = 11 : i64} {
  func.func @linear_kernel(%arg0: i32, %arg1: memref<8x128xf32, #tpu.memory_space<vmem>>, %arg2: memref<1xf32, #tpu.memory_space<smem>>, %arg3: memref<1xf32, #tpu.memory_space<smem>>, %arg4: memref<8x128xf32, #tpu.memory_space<vmem>>) attributes {dimension_semantics = [#tpu.dimension_semantics<parallel>], iteration_bounds = array<i64: 1>, scalar_prefetch = 0 : i64, scratch_operands = 0 : i64, tpu.core_type = #tpu.core_type<tc>, window_params = [{transform_indices = @transform_0, window_bounds = array<i64: 8, 128>}, {transform_indices = @transform_1, window_bounds = array<i64: 1>}, {transform_indices = @transform_2, window_bounds = array<i64: 1>}, {transform_indices = @transform_3, window_bounds = array<i64: 8, 128>}]} {
    %c0 = arith.constant 0 : index
    %0 = memref.load %arg2[%c0] : memref<1xf32, #tpu.memory_space<smem>>
    %c0_0 = arith.constant 0 : index
    %1 = memref.load %arg3[%c0_0] : memref<1xf32, #tpu.memory_space<smem>>
    %c0_1 = arith.constant 0 : index
    %c0_2 = arith.constant 0 : index
    %2 = vector.load %arg1[%c0_1, %c0_2] : memref<8x128xf32, #tpu.memory_space<vmem>>, vector<8x128xf32>
    %3 = vector.broadcast %0 : f32 to vector<8x128xf32>
    %4 = arith.mulf %2, %3 : vector<8x128xf32>
    %5 = vector.broadcast %1 : f32 to vector<8x128xf32>
    %6 = arith.addf %4, %5 : vector<8x128xf32>
    %c0_3 = arith.constant 0 : index
    %c0_4 = arith.constant 0 : index
    %7 = vector.load %arg4[%c0_3, %c0_4] : memref<8x128xf32, #tpu.memory_space<vmem>>, vector<8x128xf32>
    tpu.vector_store %arg4[%c0_3, %c0_4], %6 {strides = array<i32>} : memref<8x128xf32, #tpu.memory_space<vmem>>, vector<8x128xf32>,
    return
  }
  func.func @transform_0(%arg0: i32) -> (i32, i32) {
    %c0_i32 = arith.constant 0 : i32
    %c0_i32_0 = arith.constant 0 : i32
    return %arg0, %c0_i32 : i32, i32
  }
  func.func @transform_1(%arg0: i32) -> i32 {
    %c0_i32 = arith.constant 0 : i32
    %c0_i32_0 = arith.constant 0 : i32
    return %c0_i32 : i32
  }
  func.func @transform_2(%arg0: i32) -> i32 {
    %c0_i32 = arith.constant 0 : i32
    %c0_i32_0 = arith.constant 0 : i32
    return %c0_i32 : i32
  }
  func.func @transform_3(%arg0: i32) -> (i32, i32) {
    %c0_i32 = arith.constant 0 : i32
    %c0_i32_0 = arith.constant 0 : i32
    return %arg0, %c0_i32 : i32, i32
  }
}

</mosaic_0001>

<bundles_post_ra>
// kernel: tpu_custom_call.1
= control target key start
LH: loop header
LB: loop body
LE: loop exit
PB: predicated region body
PF: predicated region fallthrough
CT: control target
= control target key end

     0   :  { %10 = vsyncpa [#allocation5], 0  ;;  %s154_s0 = inlined_call_operand.hbm [shape: f32[8,128], index: 0, kind: input, shape index: {}]   ;;  %s155_s1 = inlined_call_operand.<no memory space> [shape: f32[1], index: 1, kind: input, shape index: {}]   ;;  %s156_s2 = inlined_call_operand.<no memory space> [shape: f32[1], index: 2, kind: input, shape index: {}]   ;;  %s157_s3 = inlined_call_operand.hbm [shape: f32[8,128], index: 3, kind: output, shape index: {}]  }
   0x1   :  { %11 = vsyncpa [#allocation6], 0  ;;  %s102_s12 = smov [#allocation4]   ;;  %s54_s16 = scalar_lea.hbm %s154_s0, 128 }
   0x2   :  { %s18_s13 = sshll.u32 %s102_s12, 4  ;;  %p55_p0 = scmp.ne.s32.totalorder %s154_s0, %s54_s16  ;;  %s19_s13 = int_to_ptr.vmem [resolvable:$true] %s18_s13 }
   0x3   :  { %p58_p1 = scmp.lt.u32.totalorder %s54_s16, %s154_s0 }
   0x5   :  { %p60_p2 = pnand %p58_p1, %p55_p0 }
   0x7   :  { %63 = shalt.err (!%p60_p2)
}
   0x8   :  { %s64_s21 = scalar_lea.vmem %s19_s13, 128  ;;  %p69_p4 = scmp.lt.s32.totalorder %s19_s13, %s19_s13 }
   0x9   :  { %p65_p3 = scmp.ne.s32.totalorder %s19_s13, %s64_s21  ;;  %p70_p5 = scmp.lt.s32.totalorder %s64_s21, %s64_s21 }
   0xb   :  { %p71_p6 = por %p70_p5, %p69_p4 }
   0xd   :  { %p72_p7 = pnand %p71_p6, %p65_p3 }
   0xf   :  { %75 = shalt.err (!%p72_p7)
}
  0x10   :  { %21 = dma.hbm_to_vmem [thread:$0]  %s154_s0, 128, %s19_s13, [#allocation5]  }
  0x11   :  { %98 = dma.done.wait [#allocation5], 128  }
  0x12   :  { %99 = vsyncadd [#allocation5], 4294967168  ;;  %v32_v0 = vstv %s155_s1  ;;  %v31_v1 = vld [vmem:[#allocation4] sm:$0xff]  ;;  %v34_v2 = vstv %s156_s2  ;;  %s103_s28 = smov [#allocation7]  }
  0x13   :  { %s43_s29 = sshll.u32 %s103_s28, 4  ;;  %v33_v3 = vmul.f32 %v32_v0, %v31_v1  ;;  %s44_s29 = int_to_ptr.vmem [resolvable:$true] %s43_s29 }
  0x14   :  { %s76_s30 = scalar_lea.vmem %s44_s29, 128  ;;  %p81_p9 = scmp.lt.s32.totalorder %s44_s29, %s44_s29 }
  0x15   :  { %v35_v4 = vadd.f32 %v34_v2, %v33_v3  ;;  %p77_p8 = scmp.ne.s32.totalorder %s44_s29, %s76_s30  ;;  %p82_p10 = scmp.lt.s32.totalorder %s76_s30, %s76_s30 }
  0x17   :  { %36 = vst [vmem:[#allocation7] sm:$0xff] %v35_v4  ;;  %p83_p11 = por %p82_p10, %p81_p9 }
  0x19   :  { %p84_p12 = pnand %p83_p11, %p77_p8 }
  0x1b   :  { %87 = shalt.err (!%p84_p12)
}
  0x1c   :  { %s88_s4 = scalar_lea.hbm %s157_s3, 128 }
  0x1d   :  { %p89_p13 = scmp.ne.s32.totalorder %s157_s3, %s88_s4  ;;  %p92_p0 = scmp.lt.u32.totalorder %s88_s4, %s157_s3 }
  0x1f   :  { %p94_p1 = pnand %p92_p0, %p89_p13 }
  0x21   :  { %97 = shalt.err (!%p94_p1)
}
  0x22   :  { %46 = dma.vmem_to_hbm [thread:$0]  %s44_s29, 128, %s157_s3, [#allocation6]  }
  0x23   :  { %100 = dma.done.wait [#allocation6], 128  }
  0x24   :  { %101 = vsyncadd [#allocation6], 4294967168 }
  0x25   :  { %50 = vsyncpa [#allocation5], 1 }
  0x26   :  { %51 = vsyncpa [#allocation6], 1 }

</bundles_post_ra>
